<compile_context>
chip_gen: v5e
topology: v5e:2x2
jax: 0.10.0
libtpu: 0.0.40
codegen_flags: <defaults>
</compile_context>

<pallas_src>
import jax
import jax.numpy as jnp
from jax.experimental import pallas as pl
from jax.experimental.pallas import tpu as pltpu


# ----------------------------- Pallas kernel ------------------------------- #
def _deblock_kernel(x_ref, u_ref, s_ref, w_ref, b_ref, o_ref):
    # x_ref : (N_in,  B*C_in)      bf16, batch folded into the lane axis
    # u_ref : (N_out, N_in)        bf16 dense up-transform (Pool matrix)
    # s_ref : (N_out, N_out)       bf16 scaled Laplacian L_hat
    # w_ref : (K*B*C_in, B*C_out)  bf16 fused (k-stacked, batch-block-diag) weights
    # b_ref : (1, B*C_out)         f32 bias tiled over batch
    # o_ref : (N_out, B*C_out)     f32 output slab
    bc_in = x_ref.shape[1]
    K = w_ref.shape[0] // bc_in
    cdt = w_ref.dtype                      # bf16 MXU operand dtype

    x = x_ref[...]                         # bf16 (N_in, B*C_in)
    S = s_ref[...]                         # bf16 (N_out, N_out)

    # ---- Pool: up-transform along the node axis, whole batch at once ----
    t0_f = jnp.dot(u_ref[...], x, preferred_element_type=jnp.float32)  # f32 (N_out, B*C_in)
    t0_b = t0_f.astype(cdt)

    # ---- Chebyshev recurrence: T_k = 2 S T_{k-1} - T_{k-2}  (f32 carry) ----
    # Each term is cast to bf16 exactly once; the bf16 copy is reused as the
    # next recurrence MXU operand and as a slice of the fused-weight operand.
    cheb_b = [t0_b]
    if K > 1:
        t1_f = jnp.dot(S, t0_b, preferred_element_type=jnp.float32)
        t1_b = t1_f.astype(cdt)
        cheb_b.append(t1_b)
        t_km2_f, t_km1_b = t0_f, t1_b
        t_km1_f = t1_f
        for _ in range(2, K):
            t_k_f = 2.0 * jnp.dot(S, t_km1_b,
                                  preferred_element_type=jnp.float32) - t_km2_f
            t_k_b = t_k_f.astype(cdt)
            cheb_b.append(t_k_b)
            t_km2_f, t_km1_f, t_km1_b = t_km1_f, t_k_f, t_k_b

    # ---- Fused weight contraction: one matmul instead of K skinny ones ----
    t_all = jnp.concatenate(cheb_b, axis=-1)          # bf16 (N_out, K*B*C_in)
    acc = jnp.dot(t_all, w_ref[...], preferred_element_type=jnp.float32)
    acc = acc + b_ref[...]                            # f32 bias (exact)

    # ---- ELU (alpha = 1); clamp keeps exp() finite on the unselected branch ----
    neg = jnp.exp(jnp.minimum(acc, 0.0)) - 1.0
    o_ref[...] = jnp.where(acc > 0.0, acc, neg).astype(o_ref.dtype)


def deblock_forward(x, U, S, W, bias):
    """x: (B, N_in, C_in); U: (N_out, N_in); S: (N_out, N_out);
       W: (K, C_in, C_out); bias: (C_out,).  Returns (B, N_out, C_out)."""
    B, N_in, C_in = x.shape
    N_out = U.shape[0]
    K, _, C_out = W.shape

    # Fold batch into the lane axis: (B, N_in, C_in) -> (N_in, B*C_in).
    x2 = jnp.transpose(x, (1, 0, 2)).reshape(N_in, B * C_in).astype(jnp.bfloat16)
    U_bf = U.astype(jnp.bfloat16)
    S_bf = S.astype(jnp.bfloat16)

    # Fused weight: W_all[k*B*C_in + b*C_in + c, b'*C_out + d] = (b==b') * W[k,c,d]
    w_all = jnp.einsum("bB,kcd->kbcBd", jnp.eye(B, dtype=W.dtype), W)
    w_all = w_all.reshape(K * B * C_in, B * C_out).astype(jnp.bfloat16)

    b_row = jnp.tile(bias, B).reshape(1, B * C_out).astype(jnp.float32)

    flops = (2 * N_out * N_in * B * C_in                       # pool matmul
             + 2 * max(K - 1, 0) * N_out * N_out * B * C_in    # Chebyshev recurrence
             + 2 * N_out * (K * B * C_in) * (B * C_out))       # fused weight matmul
    bytes_accessed = (2 * (N_in * B * C_in + N_out * N_in + N_out * N_out
                           + K * B * C_in * B * C_out)         # bf16 inputs
                      + 4 * (B * C_out + N_out * B * C_out))   # f32 bias + output

    out2 = pl.pallas_call(
        _deblock_kernel,
        out_shape=jax.ShapeDtypeStruct((N_out, B * C_out), jnp.float32),
        in_specs=[pl.BlockSpec(memory_space=pltpu.MemorySpace.VMEM)] * 5,
        out_specs=pl.BlockSpec(memory_space=pltpu.MemorySpace.VMEM),
        compiler_params=pltpu.CompilerParams(vmem_limit_bytes=48 * 1024 * 1024),
        cost_estimate=pl.CostEstimate(flops=int(flops),
                                      transcendentals=int(N_out * B * C_out),
                                      bytes_accessed=int(bytes_accessed)),
    )(x2, U_bf, S_bf, w_all, b_row)

    # Un-fold the batch: (N_out, B*C_out) -> (B, N_out, C_out).
    return out2.reshape(N_out, B, C_out).transpose(1, 0, 2).astype(x.dtype)


# ------------------------------ glue / setup -------------------------------- #
def dense_up_transform(indices, values, shape):
    """Densify the sparse up-transform (row, col, value) triplets."""
    U = jnp.zeros(shape, dtype=values.dtype)
    return U.at[indices[0], indices[1]].add(values)


def cheb_laplacian_dense(edge_index, num_nodes):
    """Dense scaled Laplacian used by torch_geometric ChebConv (sym, lambda_max=2):
       L_hat = (2/lambda_max) * (I - D^{-1/2} A D^{-1/2}) - I = -D^{-1/2} A D^{-1/2}."""
    row, col = edge_index
    w = jnp.ones(row.shape[0], dtype=jnp.float32)
    A = jnp.zeros((num_nodes, num_nodes), dtype=jnp.float32).at[row, col].add(w)
    deg = A.sum(axis=1)
    dinv = jnp.where(deg > 0, 1.0 / jnp.sqrt(deg), 0.0)
    return -(dinv[:, None] * A * dinv[None, :])


def xavier_uniform(key, shape):
    fan_in, fan_out = shape[-2], shape[-1]
    bound = jnp.sqrt(6.0 / (fan_in + fan_out))
    return jax.random.uniform(key, shape, jnp.float32, -bound, bound)


# ------------------------------ pure-JAX ref -------------------------------- #
def deblock_reference(x, U, S, W, bias, compute_dtype=jnp.float32):
    """Pure-JAX reference.  With compute_dtype=bfloat16 it mirrors the kernel's
    mixed-precision scheme (bf16 matmul operands, f32 accumulation)."""
    cd = compute_dtype
    f32 = jnp.float32
    Uc, Sc, Wc = U.astype(cd), S.astype(cd), W.astype(cd)
    K = W.shape[0]

    t0 = jnp.einsum("oi,bic->boc", Uc, x.astype(cd), preferred_element_type=f32)
    acc = jnp.einsum("boc,cd->bod", t0.astype(cd), Wc[0], preferred_element_type=f32)
    t_km2 = t0
    if K > 1:
        t1 = jnp.einsum("oe,bec->boc", Sc, t0.astype(cd), preferred_element_type=f32)
        acc = acc + jnp.einsum("boc,cd->bod", t1.astype(cd), Wc[1],
                               preferred_element_type=f32)
        t_km1 = t1
        for k in range(2, K):
            t_k = 2.0 * jnp.einsum("oe,bec->boc", Sc, t_km1.astype(cd),
                                   preferred_element_type=f32) - t_km2
            acc = acc + jnp.einsum("boc,cd->bod", t_k.astype(cd), Wc[k],
                                   preferred_element_type=f32)
            t_km2, t_km1 = t_km1, t_k
    acc = acc + bias[None, None, :].astype(f32)
    return jnp.where(acc > 0.0, acc, jnp.expm1(acc))


# ---------------------------------- main ------------------------------------ #
if __name__ == "__main__":
    key = jax.random.PRNGKey(0)
    B, N_in, N_out = 2, 8, 16          # up-transform upsamples 8 -> 16 vertices
    C_in, C_out, K = 4, 8, 3

    k_x, k_uv, k_e, k_w = jax.random.split(key, 4)

    # input features
    x = jax.random.normal(k_x, (B, N_in, C_in), dtype=jnp.float32)

    # sparse up-transform: each output vertex pulls from 2 input vertices
    rows = jnp.repeat(jnp.arange(N_out), 2)
    cols = jax.random.randint(k_uv, (N_out * 2,), 0, N_in)
    vals = jax.random.uniform(k_uv, (N_out * 2,), jnp.float32, 0.1, 1.0)
    U = dense_up_transform(jnp.stack([rows, cols]), vals, (N_out, N_in))

    # undirected ring + a few random chords on the upsampled graph
    src = jnp.arange(N_out)
    dst = (src + 1) % N_out
    extra_s = jax.random.randint(k_e, (8,), 0, N_out)
    extra_d = jax.random.randint(jax.random.fold_in(k_e, 1), (8,), 0, N_out)
    ei_s = jnp.concatenate([src, dst, extra_s, extra_d])
    ei_d = jnp.concatenate([dst, src, extra_d, extra_s])
    edge_index = jnp.stack([ei_s, ei_d])
    S = cheb_laplacian_dense(edge_index, N_out)

    # ChebConv parameters: xavier_uniform weights, zero bias (reset_parameters)
    W = jnp.stack([xavier_uniform(jax.random.fold_in(k_w, k), (C_in, C_out))
                   for k in range(K)])
    bias = jnp.zeros((C_out,), dtype=jnp.float32)

    out = deblock_forward(x, U, S, W, bias)
    out = jax.block_until_ready(out)
    assert out.shape == (B, N_out, C_out)

    # Tight gate: reference that mirrors the kernel's bf16-operand / f32-accum scheme.
    ref_bf16 = deblock_reference(x, U, S, W, bias, compute_dtype=jnp.bfloat16)
    assert jnp.allclose(out, ref_bf16, atol=2e-3, rtol=2e-3), "mismatch vs bf16-matched ref"

    # Loose gate: pure-f32 reference (bf16 MXU operands compound ~1% rounding over K steps).
    ref_f32 = deblock_reference(x, U, S, W, bias)
    err = float(jnp.max(jnp.abs(out - ref_f32)))
    scale = float(jnp.max(jnp.abs(ref_f32))) + 1e-6
    assert err <= 5e-2 * scale + 1e-2, f"bf16 deviation too large: {err} (scale {scale})"

    print("KERNEL_OK")
</pallas_src>

<mosaic_0001>
module attributes {stable_mosaic.version = 11 : i64} {
  func.func @_deblock_kernel(%arg0: memref<8x8xbf16, #tpu.memory_space<vmem>>, %arg1: memref<16x8xbf16, #tpu.memory_space<vmem>>, %arg2: memref<16x16xbf16, #tpu.memory_space<vmem>>, %arg3: memref<24x16xbf16, #tpu.memory_space<vmem>>, %arg4: memref<1x16xf32, #tpu.memory_space<vmem>>, %arg5: memref<16x16xf32, #tpu.memory_space<vmem>>) attributes {dimension_semantics = [], scalar_prefetch = 0 : i64, scratch_operands = 0 : i64, tpu.core_type = #tpu.core_type<tc>} {
    %c0 = arith.constant 0 : index
    %c0_0 = arith.constant 0 : index
    %0 = vector.load %arg0[%c0, %c0_0] : memref<8x8xbf16, #tpu.memory_space<vmem>>, vector<8x8xbf16>
    %c0_1 = arith.constant 0 : index
    %c0_2 = arith.constant 0 : index
    %1 = vector.load %arg2[%c0_1, %c0_2] : memref<16x16xbf16, #tpu.memory_space<vmem>>, vector<16x16xbf16>
    %c0_3 = arith.constant 0 : index
    %c0_4 = arith.constant 0 : index
    %2 = vector.load %arg1[%c0_3, %c0_4] : memref<16x8xbf16, #tpu.memory_space<vmem>>, vector<16x8xbf16>
    %cst = arith.constant dense<0.000000e+00> : vector<16x8xf32>
    %3 = tpu.matmul %2, %0, %cst {dimension_numbers = #tpu.dot_dimension_numbers<[1], [0], [0], [1], [0, 0, 1, 1], [], []>} : vector<16x8xbf16>, vector<8x8xbf16>, vector<16x8xf32> -> vector<16x8xf32>
    %4 = arith.truncf %3 : vector<16x8xf32> to vector<16x8xbf16>
    %cst_5 = arith.constant dense<0.000000e+00> : vector<16x8xf32>
    %5 = tpu.matmul %1, %4, %cst_5 {dimension_numbers = #tpu.dot_dimension_numbers<[1], [0], [0], [1], [0, 0, 1, 1], [], []>} : vector<16x16xbf16>, vector<16x8xbf16>, vector<16x8xf32> -> vector<16x8xf32>
    %6 = arith.truncf %5 : vector<16x8xf32> to vector<16x8xbf16>
    %cst_6 = arith.constant dense<0.000000e+00> : vector<16x8xf32>
    %7 = tpu.matmul %1, %6, %cst_6 {dimension_numbers = #tpu.dot_dimension_numbers<[1], [0], [0], [1], [0, 0, 1, 1], [], []>} : vector<16x16xbf16>, vector<16x8xbf16>, vector<16x8xf32> -> vector<16x8xf32>
    %cst_7 = arith.constant 2.000000e+00 : f32
    %8 = vector.broadcast %cst_7 : f32 to vector<16x8xf32>
    %9 = arith.mulf %8, %7 : vector<16x8xf32>
    %10 = arith.subf %9, %3 : vector<16x8xf32>
    %11 = arith.truncf %10 : vector<16x8xf32> to vector<16x8xbf16>
    %12 = tpu.concatenate %4, %6, %11 in 1 : vector<16x8xbf16>, vector<16x8xbf16>, vector<16x8xbf16> -> vector<16x24xbf16>
    %c0_8 = arith.constant 0 : index
    %c0_9 = arith.constant 0 : index
    %13 = vector.load %arg3[%c0_8, %c0_9] : memref<24x16xbf16, #tpu.memory_space<vmem>>, vector<24x16xbf16>
    %cst_10 = arith.constant dense<0.000000e+00> : vector<16x16xf32>
    %14 = tpu.matmul %12, %13, %cst_10 {dimension_numbers = #tpu.dot_dimension_numbers<[1], [0], [0], [1], [0, 0, 1, 1], [], []>} : vector<16x24xbf16>, vector<24x16xbf16>, vector<16x16xf32> -> vector<16x16xf32>
    %c0_11 = arith.constant 0 : index
    %c0_12 = arith.constant 0 : index
    %15 = vector.load %arg4[%c0_11, %c0_12] : memref<1x16xf32, #tpu.memory_space<vmem>>, vector<1x16xf32>
    %16 = vector.broadcast %15 : vector<1x16xf32> to vector<16x16xf32>
    %17 = arith.addf %14, %16 : vector<16x16xf32>
    %cst_13 = arith.constant 0.000000e+00 : f32
    %18 = vector.broadcast %cst_13 : f32 to vector<16x16xf32>
    %19 = arith.minimumf %17, %18 : vector<16x16xf32>
    %20 = math.exp %19 : vector<16x16xf32>
    %cst_14 = arith.constant 1.000000e+00 : f32
    %21 = vector.broadcast %cst_14 : f32 to vector<16x16xf32>
    %22 = arith.subf %20, %21 : vector<16x16xf32>
    %cst_15 = arith.constant 0.000000e+00 : f32
    %23 = vector.broadcast %cst_15 : f32 to vector<16x16xf32>
    %24 = arith.cmpf ogt, %17, %23 : vector<16x16xf32>
    %25 = arith.select %24, %17, %22 : vector<16x16xi1>, vector<16x16xf32>
    %c0_16 = arith.constant 0 : index
    %c0_17 = arith.constant 0 : index
    %26 = vector.load %arg5[%c0_16, %c0_17] : memref<16x16xf32, #tpu.memory_space<vmem>>, vector<16x16xf32>
    tpu.vector_store %arg5[%c0_16, %c0_17], %25 {strides = array<i32>} : memref<16x16xf32, #tpu.memory_space<vmem>>, vector<16x16xf32>,
    return
  }
}

</mosaic_0001>

<bundles_post_ra>
// kernel: tpu_custom_call.1
= control target key start
LH: loop header
LB: loop body
LE: loop exit
PB: predicated region body
PF: predicated region fallthrough
CT: control target
= control target key end

     0   :  { %vm36_vm0 = vcmask 1043456   ;;  %s317_s0 = inlined_call_operand.vmem [shape: bf16[8,8], index: 0, kind: input, shape index: {}]   ;;  %s318_s1 = inlined_call_operand.vmem [shape: bf16[16,8], index: 1, kind: input, shape index: {}]   ;;  %s319_s2 = inlined_call_operand.vmem [shape: bf16[16,16], index: 2, kind: input, shape index: {}]   ;;  %s320_s3 = inlined_call_operand.vmem [shape: bf16[24,16], index: 3, kind: input, shape index: {}]   ;;  %s321_s4 = inlined_call_operand.vmem [shape: f32[1,16], index: 4, kind: input, shape index: {}]   ;;  %s322_s5 = inlined_call_operand.hbm [shape: f32[16,16], index: 5, kind: output, shape index: {}]  }
   0x1   :  { %v22_v0 = vld [vmem:[%s317_s0] sm:$0xf] }
   0x2   :  { %v38_v1 = vsel %vm36_vm0, %v22_v0, 0  ;;  %v214_v2 = vld [vmem:[%s318_s1] sm:$0xff] }
   0x3   :  { %10 = vsyncpa [#allocation3], 0  ;;  %47 = vmatpush.bf16.msra.mxu0 %v38_v1  ;;  %vm32_vm1 = vcmask 64512   ;;  %v213_v10 = vld [vmem:[%s319_s2] sm:$0xff]  ;;  %vm67_vm2 = vcmask 130048   ;;  %s251_s1 = smov 8  }
   0x4   :  { %v129_v18 = vld [vmem:[%s320_s3 + $0x8] sm:$0xf]  ;;  %v215_v22 = vld [vmem:[%s320_s3] sm:$0xff]  ;;  %s252_s26 = smov 16   ;;  %vm143_vm3 = vcmask 195584   ;;  %s253_s28 = smov [#allocation2]  }
   0x5   :  { %v139_v19 = vunpack.c.l.b16 %v129_v18  ;;  %v220_v38 = vld [vmem:[%s321_s4] ss:$0 sm:$0xff]  ;;  %s181_s29 = sshll.u32 %s253_s28, 4  ;;  %s183_s6 = sshll.u32 %s322_s5, 4  ;;  %s182_s29 = int_to_ptr.vmem [resolvable:$true] %s181_s29  ;;  %s184_s6 = int_to_ptr.hbm [resolvable:$true] %s183_s6 }
   0x6   :  { %199 = vmatmul.msk.bf16.vlgmr.msra.gmra.mxu0 %vm32_vm1, %v214_v2  ;;  %s254_s7 = smov 128  }
   0x7   :  { %v141_v20 = vpack.c.b16 %v139_v19, %v139_v19 }
   0x9   :  { %v147_v21 = vsel %vm36_vm0, %v141_v20, 0 }
   0xa   :  { %155 = vmatpush.bf16.msra.mxu3 %v147_v21 }
   0xe   :  { %156 = vmatpush.bf16.msra.mxu3 %v215_v22 }
  0x83   :  { %v49_v3 = vpop.f32.mrf.mxu0 }
  0x84   :  { %v54_v4 = vpack.c.bf16 %v49_v3, %v49_v3 }
  0x86   :  { %v63_v7 = vunpack.c.l.b16 %v54_v4 }
  0x8b   :  { %v51_v5 = vpop.f32.mrf.mxu0 }
  0x8c   :  { %v55_v6 = vpack.c.bf16 %v51_v5, %v51_v5 }
  0x8e   :  { %v64_v8 = vunpack.c.l.b16 %v55_v6 }
  0x90   :  { %v65_v9 = vpack.c.b16 %v64_v8, %v63_v7 }
  0x92   :  { %78 = vmatpush.bf16.msra.mxu1 %v65_v9 }
  0x95   :  { %204 = vmatmul.msk.bf16.vlgmr.msra.gmra.mxu1 %vm67_vm2, %v213_v10 }
 0x112   :  { %v80_v11 = vpop.f32.mrf.mxu1 }
 0x113   :  { %v85_v12 = vpack.c.bf16 %v80_v11, %v80_v11 }
 0x115   :  { %v89_v15 = vunpack.c.l.b16 %v85_v12 }
 0x11a   :  { %v82_v13 = vpop.f32.mrf.mxu1 }
 0x11b   :  { %v86_v14 = vpack.c.bf16 %v82_v13, %v82_v13 }
 0x11d   :  { %v90_v16 = vunpack.c.l.b16 %v86_v14 }
 0x11f   :  { %v91_v17 = vpack.c.b16 %v90_v16, %v89_v15 }
 0x121   :  { %113 = vrot.lane.b32.xlu0 %v91_v17, %s251_s1  ;;  %100 = vmatpush.bf16.msra.mxu2 %v91_v17 }
 0x124   :  { %205 = vmatmul.msk.bf16.vlgmr.msra.gmra.mxu2 %vm67_vm2, %v213_v10 }
 0x193   :  { %v114_v34 = vpop.permute.xlu0 %113 }
 0x194   :  { %v124_v35 = vsel %vm32_vm1, %v65_v9, %v114_v34 }
 0x1a7   :  { %v102_v23 = vpop.f32.mrf.mxu2 }
 0x1a8   :  { %v107_v24 = vmul.f32 2.0, %v102_v23 }
 0x1aa   :  { %v109_v25 = vsub.f32 %v107_v24, %v49_v3 }
 0x1ac   :  { %v111_v28 = vpack.c.bf16 %v109_v25, %v109_v25 }
 0x1ae   :  { %v117_v31 = vunpack.c.l.b16 %v111_v28 }
 0x1af   :  { %v104_v26 = vpop.f32.mrf.mxu2 }
 0x1b0   :  { %v108_v27 = vmul.f32 2.0, %v104_v26 }
 0x1b2   :  { %v110_v29 = vsub.f32 %v108_v27, %v51_v5 }
 0x1b4   :  { %v112_v30 = vpack.c.bf16 %v110_v29, %v110_v29 }
 0x1b6   :  { %v118_v32 = vunpack.c.l.b16 %v112_v30 }
 0x1b8   :  { %v119_v33 = vpack.c.b16 %v118_v32, %v117_v31 }
 0x1ba   :  { %120 = vrot.lane.b32.xlu0 %v119_v33, %s252_s26 }
 0x22c   :  { %v121_v36 = vpop.permute.xlu0 %120 }
 0x22d   :  { %v126_v37 = vsel %vm67_vm2, %v124_v35, %v121_v36 }
 0x22e   :  { %210 = vmatmul.msk.bf16.vlgmr.msra.gmra.mxu3 %vm143_vm3, %v126_v37 }
 0x2b1   :  { %v158_v39 = vpop.f32.mrf.mxu3 }
 0x2b2   :  { %v159_v40 = vadd.f32 %v220_v38, %v158_v39 }
 0x2b4   :  { %v163_v41 = vmin.f32 %v159_v40, 0.0  ;;  %vm171_vm4 = vcmp.gt.f32.partialorder %v159_v40, 0.0 }
 0x2b6   :  { %v165_v42 = vmul.f32 1.442695, %v163_v41 }
 0x2b8   :  { %221 = vpow2.f32 %v165_v42 }
 0x2b9   :  { %v160_v43 = vpop.f32.mrf.mxu3 }
 0x2ba   :  { %v161_v44 = vadd.f32 %v220_v38, %v160_v43 }
 0x2bc   :  { %v164_v45 = vmin.f32 %v161_v44, 0.0  ;;  %vm172_vm5 = vcmp.gt.f32.partialorder %v161_v44, 0.0 }
 0x2be   :  { %v222_v46 = vpop.eup %221  ;;  %v167_v47 = vmul.f32 1.442695, %v164_v45 }
 0x2bf   :  { %v211_v48 = vadd.f32 -1.0, %v222_v46 }
 0x2c0   :  { %223 = vpow2.f32 %v167_v47 }
 0x2c1   :  { %v173_v49 = vsel %vm171_vm4, %v159_v40, %v211_v48 }
 0x2c2   :  { %175 = vst.msk [vmem:[#allocation2] sm:$0xff] %vm67_vm2, %v173_v49 }
 0x2c6   :  { %v224_v50 = vpop.eup %223 }
 0x2c7   :  { %v212_v51 = vadd.f32 -1.0, %v224_v50 }
 0x2c9   :  { %v174_v52 = vsel %vm172_vm5, %v161_v44, %v212_v51 }
 0x2ca   :  { %176 = vst.msk [vmem:[#allocation2 + $0x8] sm:$0xff] %vm67_vm2, %v174_v52 }
 0x2cb   :  { %189 = dma.vmem_to_hbm [thread:$0]  %s182_s29, 256, %s184_s6, [#allocation3], %s254_s7, %s254_s7, %s251_s1  }
 0x2cc   :  { %249 = dma.done.wait [#allocation3], 256  }
 0x2cd   :  { %250 = vsyncadd [#allocation3], 4294967040 }
 0x2ce   :  { %194 = vsyncpa [#allocation3], 1 }

</bundles_post_ra>
